<compile_context>
chip_gen: v7x
topology: tpu7x:2x2x1
jax: 0.10.0
libtpu: 0.0.40
codegen_flags: <defaults>
</compile_context>

<pallas_src>
import jax
import jax.numpy as jnp
from jax import lax
from jax.experimental import pallas as pl
from jax.experimental.pallas import tpu as pltpu


# ---------------------------------------------------------------------------
# Hardware-aware sizing helpers
# ---------------------------------------------------------------------------

def _vmem_capacity_bytes():
    """Physical per-core VMEM (generation-aware); conservative fallback."""
    try:
        return int(pltpu.get_tpu_info().vmem_capacity_bytes)
    except Exception:
        return 64 << 20          # v7x per-TC size: safe lower bound everywhere


def _has_megacore():
    """True iff the chip has 2 TensorCores (v4 / v5p / v7x). Conservative."""
    try:
        kind = jax.devices()[0].device_kind.lower()
    except Exception:
        return False
    return any(tag in kind for tag in ("v4", "v5p", "v7"))


def _choose_tile(cd_pad, bytes_per_k, budget_bytes, min_nk=2):
    """Largest lane-aligned divisor of cd_pad that fits `budget_bytes` and
    leaves at least `min_nk` grid steps (so the feature DMA overlaps the
    MXU work instead of degenerating to one fetch + one matmul)."""
    cands = [t for t in range(128, cd_pad + 1, 128) if cd_pad % t == 0]
    if not cands:
        return cd_pad                                    # cd_pad < 128
    max_tk_mem = budget_bytes // max(bytes_per_k, 1)
    max_tk_pipe = cd_pad // min_nk if cd_pad // 128 >= min_nk else cd_pad
    ok = [t for t in cands if t <= max_tk_mem and t <= max_tk_pipe]
    return max(ok) if ok else cands[0]


def _choose_tn(ab):
    """Largest lane-aligned Gram column tile giving >= 2 column blocks."""
    cands = [t for t in range(128, ab // 2 + 1, 128) if ab % t == 0]
    return max(cands) if cands else None


# ---------------------------------------------------------------------------
# Kernel factory
# ---------------------------------------------------------------------------

def make_style_loss_fn(a, b, c, d, weight, *,
                       compute_dtype="auto",
                       precision=None,
                       col_parallel=None,
                       tk=None):
    """Builds a jitted fn: (input_nchw, target) -> (output, G_scaled, loss)."""
    ab, cd = a * b, c * d
    norm = float(a * b * c * d)
    scale = float(weight) / norm          # .div(a*b*c*d) then .mul_(weight)

    # bf16 MXU compute (with f32 accumulation) once the kernel is clearly
    # compute-bound; small-ab cases stay f32 for exact PyTorch parity.
    if compute_dtype == "auto":
        compute_dtype = jnp.bfloat16 if ab >= 256 else None
    if precision is None:
        precision = (lax.Precision.HIGHEST if compute_dtype is None
                     else lax.Precision.DEFAULT)

    # Zero-pad the contraction dim to a lane multiple: zeros do not change
    # the Gram sum and every K tile stays lane-aligned & pipelineable.
    cd_pad = ((cd + 127) // 128) * 128
    itemsize = 4                                      # features read as f32

    vmem_phys = _vmem_capacity_bytes()
    vmem_cap = (vmem_phys * 3) // 4                   # headroom for Mosaic

    tn = _choose_tn(ab)
    if col_parallel is None:
        col_parallel = (tn is not None) and (ab >= 256) and _has_megacore()
    col_parallel = bool(col_parallel and tn is not None)

    # -----------------------------------------------------------------
    # Path A: 1-D reduction grid over K (HBM-bound / small-ab regime).
    # Single feature stream; loss fused in the epilogue (SMEM scalar).
    # -----------------------------------------------------------------
    if not col_parallel:
        # Resident target (2 bufs) + resident G output (2 bufs), both f32.
        fixed = 4 * ab * ab * 4
        if tk is None:
            tk = _choose_tile(cd_pad, 2 * ab * itemsize,
                              vmem_cap - fixed - (4 << 20))
        assert cd_pad % tk == 0, "tk must tile the padded K dim exactly"
        nk = cd_pad // tk

        def style_loss_kernel(feat_ref, target_ref, g_ref, loss_ref):
            k = pl.program_id(0)

            @pl.when(k == 0)
            def _init():
                g_ref[...] = jnp.zeros_like(g_ref)

            f = feat_ref[...]
            if compute_dtype is not None:
                f = f.astype(compute_dtype)
            # Contract the LAST dim of both operands: MXU consumes the tile
            # with a transposed-RHS read, no materialized f.T (verified via
            # pl.lower_as_mlir: no per-tile vxpose).
            g_ref[...] += lax.dot_general(
                f, f,
                dimension_numbers=(((1,), (1,)), ((), ())),
                preferred_element_type=jnp.float32,
                precision=precision)

            @pl.when(k == pl.num_programs(0) - 1)
            def _finalize():
                G = g_ref[...] * scale
                g_ref[...] = G
                diff = G - target_ref[...].astype(jnp.float32)
                loss_ref[0, 0] = jnp.mean(diff * diff)   # nn.MSELoss 'mean'

        vmem_needed = fixed + 2 * ab * tk * itemsize
        vmem_limit = int(min(max(vmem_needed + (4 << 20), 32 << 20), vmem_cap))
        vmem_limit = max(vmem_limit, vmem_needed + (2 << 20))  # never < needed

        pcall = pl.pallas_call(
            style_loss_kernel,
            out_shape=(
                jax.ShapeDtypeStruct((ab, ab), jnp.float32),   # G * weight
                jax.ShapeDtypeStruct((1, 1), jnp.float32),     # scalar loss
            ),
            grid_spec=pltpu.PrefetchScalarGridSpec(
                num_scalar_prefetch=0,
                grid=(nk,),
                in_specs=[
                    pl.BlockSpec((ab, tk), lambda k: (0, k)),  # streamed K tiles
                    pl.BlockSpec((ab, ab), lambda k: (0, 0)),  # target: fetched once
                ],
                out_specs=(
                    pl.BlockSpec((ab, ab), lambda k: (0, 0)),  # G: resident accumulator
                    pl.BlockSpec(memory_space=pltpu.SMEM),     # loss: SMEM scalar
                ),
            ),
            compiler_params=pltpu.CompilerParams(
                dimension_semantics=("arbitrary",),            # K carries the accumulator
                vmem_limit_bytes=vmem_limit,
            ),
        )

        @jax.jit
        def forward(x_nchw, target):
            features = x_nchw.reshape(ab, cd)                  # torch .view
            if cd_pad != cd:
                features = jnp.pad(features, ((0, 0), (0, cd_pad - cd)))
            G_scaled, loss = pcall(features, target)
            output = x_nchw                # "clone" — JAX arrays are immutable
            return output, G_scaled, loss.reshape(())

        return forward

    # -----------------------------------------------------------------
    # Path B: 2-D grid (Gram columns "parallel", K "arbitrary") so both
    # TensorCores work in the compute-bound (large-ab) regime.  The MSE
    # epilogue is a trivial O(ab^2) XLA op in the wrapper.
    # -----------------------------------------------------------------
    ncol = ab // tn
    fixed = 2 * ab * tn * 4                      # resident G column block (2 bufs)
    if tk is None:
        tk = _choose_tile(cd_pad, 2 * (ab + tn) * itemsize,
                          vmem_cap - fixed - (4 << 20))
    assert cd_pad % tk == 0, "tk must tile the padded K dim exactly"
    nk = cd_pad // tk

    def gram_col_kernel(lhs_ref, rhs_ref, g_ref):
        k = pl.program_id(1)

        @pl.when(k == 0)
        def _init():
            g_ref[...] = jnp.zeros_like(g_ref)

        lhs = lhs_ref[...]
        rhs = rhs_ref[...]
        if compute_dtype is not None:
            lhs = lhs.astype(compute_dtype)
            rhs = rhs.astype(compute_dtype)
        g_ref[...] += lax.dot_general(
            lhs, rhs,
            dimension_numbers=(((1,), (1,)), ((), ())),
            preferred_element_type=jnp.float32,
            precision=precision)

        @pl.when(k == pl.num_programs(1) - 1)
        def _finalize():
            g_ref[...] = g_ref[...] * scale

    vmem_needed = fixed + 2 * (ab + tn) * tk * itemsize
    vmem_limit = int(min(max(vmem_needed + (4 << 20), 32 << 20), vmem_cap))
    vmem_limit = max(vmem_limit, vmem_needed + (2 << 20))      # never < needed

    pcall = pl.pallas_call(
        gram_col_kernel,
        out_shape=jax.ShapeDtypeStruct((ab, ab), jnp.float32),
        grid_spec=pltpu.PrefetchScalarGridSpec(
            num_scalar_prefetch=0,
            grid=(ncol, nk),
            in_specs=[
                pl.BlockSpec((ab, tk), lambda j, k: (0, k)),   # full-row LHS tiles
                pl.BlockSpec((tn, tk), lambda j, k: (j, k)),   # column-block RHS tiles
            ],
            out_specs=pl.BlockSpec((ab, tn), lambda j, k: (0, j)),
        ),
        compiler_params=pltpu.CompilerParams(
            dimension_semantics=("parallel", "arbitrary"),
            vmem_limit_bytes=vmem_limit,
        ),
    )

    @jax.jit
    def forward(x_nchw, target):
        features = x_nchw.reshape(ab, cd)                      # torch .view
        if cd_pad != cd:
            features = jnp.pad(features, ((0, 0), (0, cd_pad - cd)))
        G_scaled = pcall(features, features)
        loss = jnp.mean((G_scaled - target.astype(jnp.float32)) ** 2)
        output = x_nchw                    # "clone" — JAX arrays are immutable
        return output, G_scaled, loss

    return forward


# ---------------------------------------------------------------------------
# Pure-JAX reference
# ---------------------------------------------------------------------------

def gram_reference(x_nchw, *, compute_dtype=None, precision=None):
    a, b, c, d = x_nchw.shape
    f = x_nchw.reshape(a * b, c * d)
    if compute_dtype is not None:
        f = f.astype(compute_dtype)
    G = jnp.dot(f, f.T, precision=precision,
                preferred_element_type=jnp.float32)
    return G / float(a * b * c * d)


if __name__ == "__main__":
    weight = 1000.0
    HI = lax.Precision.HIGHEST
    key = jax.random.PRNGKey(0)
    k1, k2, k3, k4 = jax.random.split(key, 4)

    # ---- Test 1: small shape, 1-D path, f32 compute (exact parity) -------
    a1, b1, c1, d1 = 2, 4, 16, 16                 # ab=8, cd=256 -> tk=128, nk=2
    x1 = jax.random.normal(k1, (a1, b1, c1, d1), dtype=jnp.float32)
    x1t = jax.random.normal(k2, (a1, b1, c1, d1), dtype=jnp.float32)
    target1 = gram_reference(x1t, precision=HI) * weight   # StyleLoss.__init__

    fwd1 = make_style_loss_fn(a1, b1, c1, d1, weight)
    out1, G1, loss1 = fwd1(x1, target1)
    jax.block_until_ready((out1, G1, loss1))

    G1_ref = gram_reference(x1, precision=HI) * weight
    loss1_ref = jnp.mean((G1_ref - target1) ** 2)
    assert jnp.allclose(out1, x1)
    assert jnp.allclose(G1, G1_ref, rtol=1e-5, atol=1e-4)
    assert jnp.allclose(loss1, loss1_ref, rtol=1e-5, atol=1e-3)

    # ---- Test 2: larger ab, column-parallel 2-D path, bf16 MXU compute ----
    a2, b2, c2, d2 = 2, 128, 16, 16               # ab=256, cd=256 -> grid=(2,2)
    x2 = jax.random.normal(k3, (a2, b2, c2, d2), dtype=jnp.float32)
    x2t = jax.random.normal(k4, (a2, b2, c2, d2), dtype=jnp.float32)
    target2 = gram_reference(x2t, precision=HI) * weight

    fwd2 = make_style_loss_fn(a2, b2, c2, d2, weight, col_parallel=True)
    out2, G2, loss2 = fwd2(x2, target2)
    jax.block_until_ready((out2, G2, loss2))

    # Reference with the same bf16-input / f32-accumulate compute recipe.
    G2_ref = gram_reference(x2, compute_dtype=jnp.bfloat16) * weight
    loss2_ref = jnp.mean((G2_ref - target2) ** 2)
    assert jnp.allclose(out2, x2)
    assert jnp.allclose(G2, G2_ref, rtol=5e-3, atol=5e-3)
    assert jnp.allclose(loss2, loss2_ref, rtol=5e-3, atol=5e-3)

    print("KERNEL_OK")
</pallas_src>

<mosaic_0001>
module attributes {stable_mosaic.version = 11 : i64} {
  func.func @style_loss_kernel(%arg0: i32, %arg1: memref<8x128xf32, #tpu.memory_space<vmem>>, %arg2: memref<8x8xf32, #tpu.memory_space<vmem>>, %arg3: memref<8x8xf32, #tpu.memory_space<vmem>>, %arg4: memref<1x1xf32, #tpu.memory_space<smem>>) attributes {dimension_semantics = [#tpu.dimension_semantics<arbitrary>], iteration_bounds = array<i64: 2>, scalar_prefetch = 0 : i64, scratch_operands = 0 : i64, tpu.core_type = #tpu.core_type<tc>, window_params = [{transform_indices = @transform_0, window_bounds = array<i64: 8, 128>}, {pipeline_mode = #tpu.pipeline_mode<synchronous>, transform_indices = @transform_1, window_bounds = array<i64: 8, 8>}, {pipeline_mode = #tpu.pipeline_mode<synchronous>, transform_indices = @transform_2, window_bounds = array<i64: 8, 8>}, {transform_indices = @transform_3, window_bounds = array<i64: 1, 1>}]} {
    %c0_i32 = arith.constant 0 : i32
    %0 = arith.cmpi eq, %arg0, %c0_i32 : i32
    %1 = arith.extui %0 : i1 to i32
    %c0_i32_0 = arith.constant 0 : i32
    %2 = arith.cmpi ne, %1, %c0_i32_0 : i32
    scf.if %2 {
      %cst_7 = arith.constant 0.000000e+00 : f32
      %11 = vector.broadcast %cst_7 : f32 to vector<8x8xf32>
      %c0_8 = arith.constant 0 : index
      %c0_9 = arith.constant 0 : index
      %12 = vector.load %arg3[%c0_8, %c0_9] : memref<8x8xf32, #tpu.memory_space<vmem>>, vector<8x8xf32>
      tpu.vector_store %arg3[%c0_8, %c0_9], %11 {strides = array<i32>} : memref<8x8xf32, #tpu.memory_space<vmem>>, vector<8x8xf32>,
    } else {
    }
    %c0 = arith.constant 0 : index
    %c0_1 = arith.constant 0 : index
    %3 = vector.load %arg1[%c0, %c0_1] : memref<8x128xf32, #tpu.memory_space<vmem>>, vector<8x128xf32>
    %c0_2 = arith.constant 0 : index
    %c0_3 = arith.constant 0 : index
    %4 = vector.load %arg3[%c0_2, %c0_3] : memref<8x8xf32, #tpu.memory_space<vmem>>, vector<8x8xf32>
    %cst = arith.constant dense<0.000000e+00> : vector<8x8xf32>
    %5 = tpu.matmul %3, %3, %cst {dimension_numbers = #tpu.dot_dimension_numbers<[1], [1], [0], [0], [0, 0, 1, 0], [], []>, precision = #tpu.contract_precision<fp32>} : vector<8x128xf32>, vector<8x128xf32>, vector<8x8xf32> -> vector<8x8xf32>
    %6 = arith.addf %4, %5 : vector<8x8xf32>
    %c0_4 = arith.constant 0 : index
    %c0_5 = arith.constant 0 : index
    %7 = vector.load %arg3[%c0_4, %c0_5] : memref<8x8xf32, #tpu.memory_space<vmem>>, vector<8x8xf32>
    tpu.vector_store %arg3[%c0_4, %c0_5], %6 {strides = array<i32>} : memref<8x8xf32, #tpu.memory_space<vmem>>, vector<8x8xf32>,
    %c1_i32 = arith.constant 1 : i32
    %8 = arith.cmpi eq, %arg0, %c1_i32 : i32
    %9 = arith.extui %8 : i1 to i32
    %c0_i32_6 = arith.constant 0 : i32
    %10 = arith.cmpi ne, %9, %c0_i32_6 : i32
    scf.if %10 {
      %c0_7 = arith.constant 0 : index
      %c0_8 = arith.constant 0 : index
      %11 = vector.load %arg3[%c0_7, %c0_8] : memref<8x8xf32, #tpu.memory_space<vmem>>, vector<8x8xf32>
      %cst_9 = arith.constant 0.48828125 : f32
      %12 = vector.broadcast %cst_9 : f32 to vector<8x8xf32>
      %13 = arith.mulf %11, %12 : vector<8x8xf32>
      %c0_10 = arith.constant 0 : index
      %c0_11 = arith.constant 0 : index
      %14 = vector.load %arg3[%c0_10, %c0_11] : memref<8x8xf32, #tpu.memory_space<vmem>>, vector<8x8xf32>
      tpu.vector_store %arg3[%c0_10, %c0_11], %13 {strides = array<i32>} : memref<8x8xf32, #tpu.memory_space<vmem>>, vector<8x8xf32>,
      %c0_12 = arith.constant 0 : index
      %c0_13 = arith.constant 0 : index
      %15 = vector.load %arg2[%c0_12, %c0_13] : memref<8x8xf32, #tpu.memory_space<vmem>>, vector<8x8xf32>
      %16 = arith.subf %13, %15 : vector<8x8xf32>
      %17 = arith.mulf %16, %16 : vector<8x8xf32>
      %18 = vector.shape_cast %17 : vector<8x8xf32> to vector<1x8x8xf32>
      %cst_14 = arith.constant dense<0.000000e+00> : vector<1xf32>
      %19 = vector.multi_reduction <add>, %18, %cst_14 [1, 2] : vector<1x8x8xf32> to vector<1xf32>
      %20 = vector.shape_cast %19 : vector<1xf32> to vector<1x1x1xf32>
      %21 = vector.extract %20[0, 0, 0] : f32 from vector<1x1x1xf32>
      %cst_15 = arith.constant 6.400000e+01 : f32
      %22 = arith.divf %21, %cst_15 : f32
      %c0_16 = arith.constant 0 : index
      %c0_17 = arith.constant 0 : index
      %23 = memref.load %arg4[%c0_16, %c0_17] : memref<1x1xf32, #tpu.memory_space<smem>>
      memref.store %22, %arg4[%c0_16, %c0_17] : memref<1x1xf32, #tpu.memory_space<smem>>
    } else {
    }
    return
  }
  func.func @transform_0(%arg0: i32) -> (i32, i32) {
    %c0_i32 = arith.constant 0 : i32
    %c0_i32_0 = arith.constant 0 : i32
    return %c0_i32, %arg0 : i32, i32
  }
  func.func @transform_1(%arg0: i32) -> (i32, i32) {
    %c0_i32 = arith.constant 0 : i32
    %c0_i32_0 = arith.constant 0 : i32
    %c0_i32_1 = arith.constant 0 : i32
    return %c0_i32, %c0_i32_0 : i32, i32
  }
  func.func @transform_2(%arg0: i32) -> (i32, i32) {
    %c0_i32 = arith.constant 0 : i32
    %c0_i32_0 = arith.constant 0 : i32
    %c0_i32_1 = arith.constant 0 : i32
    return %c0_i32, %c0_i32_0 : i32, i32
  }
  func.func @transform_3(%arg0: i32) -> (i32, i32) {
    %c0_i32 = arith.constant 0 : i32
    %c0_i32_0 = arith.constant 0 : i32
    %c0_i32_1 = arith.constant 0 : i32
    return %c0_i32, %c0_i32_0 : i32, i32
  }
}

</mosaic_0001>

<bundles_post_ra>
// kernel: forward.1
= control target key start
LH: loop header
LB: loop body
LE: loop exit
PB: predicated region body
PF: predicated region fallthrough
CT: control target
= control target key end

     0   :  { %9 = vsyncpa [#allocation3], 0  ;;  %s937_s0 = inlined_call_operand.vmem [shape: f32[8,256], index: 0, kind: input, shape index: {}]   ;;  %s938_s1 = inlined_call_operand.vmem [shape: f32[8,8], index: 1, kind: input, shape index: {}]   ;;  %s939_s2 = inlined_call_operand.hbm [shape: f32[8,8], index: 2, kind: output, shape index: {0}]   ;;  %s940_s3 = inlined_call_operand.hbm [shape: f32[1,1], index: 3, kind: output, shape index: {1}]  }
   0x1   :  { %10 = vsyncpa [#allocation4], 0  ;;  %s865_s12 = smov 0  }
   0x2 LB: > { %s871_s13 = sadd.s32 4294967295, %s838_s12   ;;  %p707_p0 = scmp.ge.s32.totalorder %s838_s12, 1  ;;  %s838_s12 = sphi %s865_s12, %s16_s12  }
   0x3   : > { %p131_p1 = scmp.lt.s32.totalorder %s838_s12, 3 }
   0x5   : > { %p132_p2 = pnand %p707_p0, %p131_p1 }
   0x6   : > { %p149_p3 = scmp.lt.s32.totalorder (!%p132_p2), %s871_s13, 1  ;;  %p709_p4 = scmp.ne.s32.totalorder (!%p132_p2), %s871_s13, 0 }
   0x7   : > { %135 = sbr.rel (%p132_p2) target bundleno = 522 (0x20a), region = 28 }
   0xe   : > { %s150_s14 = scalar_select %p149_p3, %s871_s13, 1 }
   0xf   : > { %156 = sbr.rel (%p709_p4) target bundleno = 22 (0x16), region = 32  ;;  %vm157_vm0 = vcmask (!%p709_p4), 64512   ;;  %v840_v0 = vmov (!%p709_p4), 0.0  }
  0x10   : > { %s708_s15 = sshll.u32 %s150_s14, 3  ;;  %158 = vst.msk [vmem:[#allocation2] sm:$0xff] (!%p709_p4), %vm157_vm0, %v840_v0 }
  0x11   : > { %s152_s18 = scalar_lea.vmem %s937_s0, %s708_s15 }
  0x16 PF: > { %v159_v1 = vld [vmem:[%s152_s18] sm:$0xff]  ;;  %v841_v2 = vmov 0.0   ;;  %vm842_vm1 = vmmov 0   ;;  %vm608_vm2 = vcmask 64512   ;;  %p710_p5 = scmp.ne.s32.totalorder %s871_s13, 1 }
  0x17   : > { %729 = vmatprep.subr.mxu0 %v841_v2  ;;  %v162_v3 = vand.u32 4294901760, %v159_v1  ;;  %734 = vmatprep.subr.mxu1 %v841_v2  ;;  %v160_v22 = vld [vmem:[#allocation2] sm:$0xff] }
  0x18   : > { %731 = vmatprep.mubr.msk.f32.mxu0 %vm842_vm1, %v841_v2  ;;  %736 = vmatprep.mubr.msk.f32.mxu1 %vm842_vm1, %v841_v2  ;;  %v617_v28 = vld [vmem:[%s938_s1] sm:$0xff] (!%p710_p5) }
  0x19   : > { %730 = vmatpush3.xpose.msra.mxu0 %v162_v3  ;;  %v228_v4 = vsub.f32 %v159_v1, %v162_v3 }
  0x1a   : > { %739 = vmatprep.subr.mxu0 %v841_v2 }
  0x1b   : > { %v229_v5 = vand.u32 4294901760, %v228_v4 }
  0x1d   : > { %v230_v6 = vsub.f32 %v228_v4, %v229_v5 }
  0x1f   : > { %v231_v7 = vand.u32 4294901760, %v230_v6 }
  0x21   : > { %735 = vmatpush3.xpose.msra.mxu1 %v231_v7  ;;  %732 = vmatmul.mubr.f32.vlgmr.msra.gmra.mrb[0].mxu0 %v231_v7 }
  0x22   : > { %740 = vmatpush3.xpose.msra.mxu0 %v228_v4  ;;  %744 = vmatprep.subr.mxu1 %v841_v2 }
  0x23   : > { %741 = vmatprep.mubr.msk.f32.mxu0 %vm842_vm1, %v841_v2  ;;  %749 = vmatprep.subr.mxu0 %v841_v2 }
  0x24   : > { %737 = vmatmul.mubr.f32.vlgmr.msra.gmra.mrb[0].mxu1 %v162_v3 }
  0x25   : > { %745 = vmatpush3.xpose.msra.mxu1 %v162_v3  ;;  %742 = vmatmul.mubr.f32.vlgmr.msra.gmra.mrb[2].mxu0 %v228_v4 }
  0x26   : > { %746 = vmatprep.mubr.msk.f32.mxu1 %vm842_vm1, %v841_v2  ;;  %750 = vmatpush3.xpose.msra.mxu0 %v229_v5 }
  0x27   : > { %754 = vmatprep.subr.mxu1 %v841_v2  ;;  %751 = vmatprep.mubr.msk.f32.mxu0 %vm842_vm1, %v841_v2 }
  0x28   : > { %747 = vmatmul.mubr.f32.vlgmr.msra.gmra.mrb[2].mxu1 %v229_v5 }
  0x29   : > { %755 = vmatpush3.xpose.msra.mxu1 %v162_v3  ;;  %752 = vmatmul.mubr.f32.vlgmr.msra.gmra.mrb[4].mxu0 %v162_v3 }
  0x2a   : > { %756 = vmatprep.mubr.msk.f32.mxu1 %vm842_vm1, %v841_v2 }
  0x2c   : > { %757 = vmatmul.mubr.f32.vlgmr.msra.gmra.mrb[4].mxu1 %v162_v3 }
  0xf4   : > { %v233_v8 = vpop.f32.mrb[0].mxu0 }
  0xf5   : > { %v733_v9 = vpop.f32.mrb[1].mxu0 }
  0xf7   : > { %v309_v10 = vpop.f32.mrb[0].mxu1 }
  0xf8   : > { %v310_v11 = vadd.f32 %v309_v10, %v233_v8  ;;  %v738_v12 = vpop.f32.mrb[1].mxu1  ;;  %v383_v13 = vpop.f32.mrb[2].mxu0 }
  0xf9   : > { %v743_v14 = vpop.f32.mrb[3].mxu0 }
  0xfa   : > { %v384_v15 = vadd.f32 %v383_v13, %v310_v11 }
  0xfb   : > { %v457_v16 = vpop.f32.mrb[2].mxu1 }
  0xfc   : > { %v458_v17 = vadd.f32 %v457_v16, %v384_v15  ;;  %v748_v18 = vpop.f32.mrb[3].mxu1  ;;  %v531_v19 = vpop.f32.mrb[4].mxu0 }
  0xfd   : > { %v753_v20 = vpop.f32.mrb[5].mxu0 }
  0xfe   : > { %v532_v21 = vadd.f32 %v531_v19, %v458_v17  ;;  %613 = sbr.rel (%p710_p5) target bundleno = 482 (0x1e2), region = 36 }
  0xff   : > { %v603_v23 = vpop.f32.mrb[4].mxu1 }
 0x100   : > { %v604_v24 = vadd.f32 %v603_v23, %v532_v21  ;;  %v758_v25 = vpop.f32.mrb[5].mxu1 }
 0x102   : > { %v607_v26 = vadd.f32 %v604_v24, %v160_v22 }
 0x104   : > { %609 = vst.msk [vmem:[#allocation2] sm:$0xff] %vm608_vm2, %v607_v26 }
 0x10b   : > { %v614_v27 = vld [vmem:[#allocation2] sm:$0xff] }
 0x10c   : > { %v615_v29 = vmul.f32 0.48828125, %v614_v27 }
 0x10e   : > { %616 = vst.msk [vmem:[#allocation2] sm:$0xff] %vm608_vm2, %v615_v29  ;;  %v618_v30 = vsub.f32 %v615_v29, %v617_v28 }
 0x110   : > { %v619_v31 = vmul.f32 %v618_v30, %v618_v30 }
 0x112   : > { %v620_v32 = vsel %vm608_vm2, %v619_v31, 0.0 }
 0x113   : > { %621 = vadd.xlane.f32.xlu0 %v620_v32 }
 0x1a0   : > { %v622_v33 = vpop.xlane.xlu0 %621 }
 0x1a1   : > { %v623_v34 = vrot.slane %v622_v33, 4 }
 0x1a3   : > { %v624_v35 = vadd.f32 %v623_v34, %v622_v33 }
 0x1a5   : > { %v625_v36 = vrot.slane %v624_v35, 2 }
 0x1a7   : > { %v626_v37 = vadd.f32 %v625_v36, %v624_v35 }
 0x1a9   : > { %v627_v38 = vrot.slane %v626_v37, 1 }
 0x1ab   : > { %v628_v39 = vadd.f32 %v627_v38, %v626_v37 }
 0x1ad   : > { %759 = vpush %v628_v39 }
 0x1de   : > { %s760_s21 = spop %759 }
 0x1df   : > { %s632_s22 = smul.f32 0.015625, %s760_s21 }
 0x1e1   : > { %634 = sst [smem:[#allocation5]] %s632_s22 }
 0x1e2 PF: > { %p769_p6 = scmp.eq.s32.totalorder %s871_s13, 1  ;;  %s843_s23 = smov [#allocation2]  }
 0x1e3   : > { %s642_s24 = sshll.u32 %s843_s23, 4  ;;  %s643_s24 = int_to_ptr.vmem [resolvable:$true] %s642_s24 }
 0x1e4   : > { %s786_s25 = scalar_lea.vmem %s643_s24, 128  ;;  %p793_p10 = scmp.lt.s32.totalorder %s643_s24, %s643_s24 }
 0x1e5   : > { %p787_p7 = scmp.ne.s32.totalorder %s643_s24, %s786_s25  ;;  %p794_p11 = scmp.lt.s32.totalorder %s786_s25, %s786_s25 }
 0x1e7   : > { %p788_p8 = pnand %p787_p7, %p769_p6  ;;  %p795_p12 = por %p794_p11, %p793_p10 }
 0x1e9   : > { %p789_p9 = pneg %p788_p8 }
 0x1eb   : > { %p796_p13 = pnand %p795_p12, %p789_p9 }
 0x1ed   : > { %799 = shalt.err (!%p796_p13)
}
 0x1ee   : > { %s800_s28 = scalar_lea.hbm %s939_s2, 128 }
 0x1ef   : > { %p801_p0 = scmp.ne.s32.totalorder %s939_s2, %s800_s28  ;;  %p806_p3 = scmp.lt.u32.totalorder %s800_s28, %s939_s2 }
 0x1f1   : > { %p802_p1 = pnand %p801_p0, %p769_p6 }
 0x1f3   : > { %p803_p2 = pneg %p802_p1 }
 0x1f5   : > { %p808_p4 = pnand %p806_p3, %p803_p2 }
 0x1f7   : > { %811 = shalt.err (!%p808_p4)
}
 0x1f8   : > { %762 = dma.vmem_to_hbm [thread:$0]  (%p769_p6), %s643_s24, 128, %s939_s2, [#allocation3]  }
 0x1f9   : > { %s812_s10 = scalar_lea.hbm %s940_s3, 16 }
 0x1fa   : > { %p813_p5 = scmp.ne.s32.totalorder %s940_s3, %s812_s10  ;;  %p818_p9 = scmp.lt.u32.totalorder %s812_s10, %s940_s3 }
 0x1fc   : > { %p814_p7 = pnand %p813_p5, %p769_p6 }
 0x1fe   : > { %p815_p8 = pneg %p814_p7 }
 0x200   : > { %p820_p10 = pnand %p818_p9, %p815_p8 }
 0x202   : > { %823 = shalt.err (!%p820_p10)
}
 0x203   : > { %s844_s17 = smov [#allocation5]  }
 0x204   : > { %764 = dma.smem_to_hbm (%p769_p6), %s844_s17, 16, %s940_s3, [#allocation4]  }
 0x205   : > { %829 = dma.done.wait (%p769_p6), [#allocation3], 128  }
 0x206   : > { %831 = vsyncadd (%p769_p6), [#allocation3], 4294967168 }
 0x207   : > { %833 = dma.done.wait (%p769_p6), [#allocation4], 16  }
 0x208   : > { %835 = vsyncadd (%p769_p6), [#allocation4], 4294967280 }
 0x209   : > { %663 = sfence }
 0x20a PF: > { %s16_s12 = sadd.s32 1, %s838_s12  }
 0x20b   : > { %p13_p11 = scmp.ge.s32.totalorder %s16_s12, 4  }
 0x20d   :  { %15 = sbr.rel (!%p13_p11) target bundleno = 2 (0x2), region = 73 }
 0x214   :  { %669 = vsyncpa [#allocation3], 1 }
 0x215   :  { %671 = vsyncpa [#allocation3 + $0x1], 1 }
 0x216   :  { %672 = vsyncpa [#allocation4], 1 }
 0x217   :  { %674 = vsyncpa [#allocation4 + $0x1], 1 }

</bundles_post_ra>
